<compile_context>
chip_gen: v7x
topology: tpu7x:2x2x1
jax: 0.10.0
libtpu: 0.0.40
codegen_flags: <defaults>
</compile_context>

<pallas_src>
import jax
import jax.numpy as jnp
from jax.experimental import pallas as pl
from jax.experimental.pallas import tpu as pltpu


def _dual_linear_kernel(x_ref, w1_ref, inp_ref, w2_ref, b_ref, o_ref):
    # Two canonical (M,K)x(K,N) MXU dots, accumulated in f32. Weights arrive
    # pre-transposed to (d_in, d_out), so N stays on lanes and no in-kernel
    # relayout/XLU transpose is needed. The second dot pipelines behind the
    # first for free on the MXU.
    acc = jnp.dot(x_ref[...], w1_ref[...], preferred_element_type=jnp.float32)
    acc = acc + jnp.dot(inp_ref[...], w2_ref[...],
                        preferred_element_type=jnp.float32)
    # Single fused bias (b1 + b2): a (1, d_out) row sublane-broadcast over M.
    o_ref[...] = (acc + b_ref[...]).astype(o_ref.dtype)


def dual_linear_add(x, w1, b1, inp, w2, b2, *, tm=256):
    """(x @ w1.T + b1) + (inp @ w2.T + b2) as one Pallas TPU kernel."""
    n, d_in = x.shape
    d_out = w1.shape[0]

    # One-time parameter prep (weights/biases are static, outside the hot
    # per-step path): transpose to (d_in, d_out) for canonical MXU feeding and
    # fold both biases into one broadcast row.
    w1_t = jnp.asarray(w1).T
    w2_t = jnp.asarray(w2).T
    b = (jnp.asarray(b1) + jnp.asarray(b2)).reshape(1, d_out)

    out_shape = jax.ShapeDtypeStruct((n, d_out), x.dtype)

    aligned = (n % tm == 0) and (d_in % 128 == 0) and (d_out % 128 == 0)
    if aligned:
        # Scaled-up path: grid over M ("parallel" -> shardable across v7x's
        # 2 TensorCores), lane-dense (tm, d_out) output tiles, weights + bias
        # resident (same block every grid step).
        grid = (n // tm,)
        elt = jnp.dtype(x.dtype).itemsize
        # Double-buffered activation tiles + (effectively resident) weights,
        # bias and output tile, plus headroom; clamp into a budget that fits
        # v5e's default scoped limit and v7x's 64 MiB physical VMEM.
        vmem_bytes = 2 * elt * (2 * tm * d_in + 2 * d_in * d_out
                                + d_out + tm * d_out)
        vmem_bytes = int(min(max(vmem_bytes + (4 << 20), 16 << 20), 48 << 20))
        return pl.pallas_call(
            _dual_linear_kernel,
            out_shape=out_shape,
            grid_spec=pltpu.PrefetchScalarGridSpec(
                num_scalar_prefetch=0,
                grid=grid,
                in_specs=[
                    pl.BlockSpec((tm, d_in), lambda i: (i, 0)),     # x tile
                    pl.BlockSpec((d_in, d_out), lambda i: (0, 0)),  # w1.T
                    pl.BlockSpec((tm, d_in), lambda i: (i, 0)),     # inp tile
                    pl.BlockSpec((d_in, d_out), lambda i: (0, 0)),  # w2.T
                    pl.BlockSpec((1, d_out), lambda i: (0, 0)),     # fused bias
                ],
                out_specs=pl.BlockSpec((tm, d_out), lambda i: (i, 0)),
            ),
            compiler_params=pltpu.CompilerParams(
                dimension_semantics=("parallel",),
                vmem_limit_bytes=vmem_bytes,
            ),
        )(x, w1_t, inp, w2_t, b)

    # Tiny / unaligned path (the literal 3x3 module): whole-array VMEM blocks,
    # no grid — one vreg of work, so any tiling/pipelining is pure overhead.
    # TODO(synk): for very large d_in add a K grid axis (last, "arbitrary")
    # with a pl.when(k==0)-initialized f32 VMEM accumulator scratch, and cast
    # activations/weights to bf16 (keeping the f32 accumulator) on v6e/v7x.
    vm = pl.BlockSpec(memory_space=pltpu.MemorySpace.VMEM)
    return pl.pallas_call(
        _dual_linear_kernel,
        out_shape=out_shape,
        in_specs=[vm, vm, vm, vm, vm],
        out_specs=vm,
    )(x, w1_t, inp, w2_t, b)


if __name__ == "__main__":
    key = jax.random.PRNGKey(0)
    k_x, k_inp, k_w1, k_b1, k_w2, k_b2, k_bx, k_bi = jax.random.split(key, 8)

    # --- Literal module sizes: x, inp ~ randn(3, 3); Linear(3, 3) params ----
    x = jax.random.normal(k_x, (3, 3), dtype=jnp.float32)
    inp = jax.random.normal(k_inp, (3, 3), dtype=jnp.float32)

    bound = 1.0 / (3.0 ** 0.5)  # nn.Linear default init bound
    w1 = jax.random.uniform(k_w1, (3, 3), jnp.float32, -bound, bound)
    b1 = jax.random.uniform(k_b1, (3,), jnp.float32, -bound, bound)
    w2 = jax.random.uniform(k_w2, (3, 3), jnp.float32, -bound, bound)
    b2 = jax.random.uniform(k_b2, (3,), jnp.float32, -bound, bound)

    out = dual_linear_add(x, w1, b1, inp, w2, b2)
    jax.block_until_ready(out)
    ref = (x @ w1.T + b1) + (inp @ w2.T + b2)
    assert jnp.allclose(out, ref, atol=1e-5, rtol=1e-5), "mismatch (3x3 path)"

    # --- Aligned sizes to exercise the gridded / lane-dense path ------------
    N, K, Dout = 512, 128, 128
    xb = jax.random.normal(k_bx, (N, K), dtype=jnp.float32)
    ib = jax.random.normal(k_bi, (N, K), dtype=jnp.float32)
    bnd = 1.0 / (K ** 0.5)
    w1b = jax.random.uniform(k_w1, (Dout, K), jnp.float32, -bnd, bnd)
    b1b = jax.random.uniform(k_b1, (Dout,), jnp.float32, -bnd, bnd)
    w2b = jax.random.uniform(k_w2, (Dout, K), jnp.float32, -bnd, bnd)
    b2b = jax.random.uniform(k_b2, (Dout,), jnp.float32, -bnd, bnd)

    out_b = dual_linear_add(xb, w1b, b1b, ib, w2b, b2b)
    jax.block_until_ready(out_b)
    ref_b = (xb @ w1b.T + b1b) + (ib @ w2b.T + b2b)
    assert jnp.allclose(out_b, ref_b, atol=1e-4, rtol=1e-4), "mismatch (tiled path)"

    print("KERNEL_OK")
</pallas_src>

<mosaic_0001>
module attributes {stable_mosaic.version = 11 : i64} {
  func.func @_dual_linear_kernel(%arg0: memref<3x3xf32, #tpu.memory_space<vmem>>, %arg1: memref<3x3xf32, #tpu.memory_space<vmem>>, %arg2: memref<3x3xf32, #tpu.memory_space<vmem>>, %arg3: memref<3x3xf32, #tpu.memory_space<vmem>>, %arg4: memref<1x3xf32, #tpu.memory_space<vmem>>, %arg5: memref<3x3xf32, #tpu.memory_space<vmem>>) attributes {dimension_semantics = [], scalar_prefetch = 0 : i64, scratch_operands = 0 : i64, tpu.core_type = #tpu.core_type<tc>} {
    %c0 = arith.constant 0 : index
    %c0_0 = arith.constant 0 : index
    %0 = vector.load %arg0[%c0, %c0_0] : memref<3x3xf32, #tpu.memory_space<vmem>>, vector<3x3xf32>
    %c0_1 = arith.constant 0 : index
    %c0_2 = arith.constant 0 : index
    %1 = vector.load %arg1[%c0_1, %c0_2] : memref<3x3xf32, #tpu.memory_space<vmem>>, vector<3x3xf32>
    %cst = arith.constant dense<0.000000e+00> : vector<3x3xf32>
    %2 = tpu.matmul %0, %1, %cst {dimension_numbers = #tpu.dot_dimension_numbers<[1], [0], [0], [1], [0, 0, 1, 1], [], []>} : vector<3x3xf32>, vector<3x3xf32>, vector<3x3xf32> -> vector<3x3xf32>
    %c0_3 = arith.constant 0 : index
    %c0_4 = arith.constant 0 : index
    %3 = vector.load %arg2[%c0_3, %c0_4] : memref<3x3xf32, #tpu.memory_space<vmem>>, vector<3x3xf32>
    %c0_5 = arith.constant 0 : index
    %c0_6 = arith.constant 0 : index
    %4 = vector.load %arg3[%c0_5, %c0_6] : memref<3x3xf32, #tpu.memory_space<vmem>>, vector<3x3xf32>
    %cst_7 = arith.constant dense<0.000000e+00> : vector<3x3xf32>
    %5 = tpu.matmul %3, %4, %cst_7 {dimension_numbers = #tpu.dot_dimension_numbers<[1], [0], [0], [1], [0, 0, 1, 1], [], []>} : vector<3x3xf32>, vector<3x3xf32>, vector<3x3xf32> -> vector<3x3xf32>
    %6 = arith.addf %2, %5 : vector<3x3xf32>
    %c0_8 = arith.constant 0 : index
    %c0_9 = arith.constant 0 : index
    %7 = vector.load %arg4[%c0_8, %c0_9] : memref<1x3xf32, #tpu.memory_space<vmem>>, vector<1x3xf32>
    %8 = vector.broadcast %7 : vector<1x3xf32> to vector<3x3xf32>
    %9 = arith.addf %6, %8 : vector<3x3xf32>
    %c0_10 = arith.constant 0 : index
    %c0_11 = arith.constant 0 : index
    %10 = vector.load %arg5[%c0_10, %c0_11] : memref<3x3xf32, #tpu.memory_space<vmem>>, vector<3x3xf32>
    tpu.vector_store %arg5[%c0_10, %c0_11], %9 {strides = array<i32>} : memref<3x3xf32, #tpu.memory_space<vmem>>, vector<3x3xf32>,
    return
  }
}

</mosaic_0001>

<bundles_post_ra>
// kernel: tpu_custom_call.1
= control target key start
LH: loop header
LB: loop body
LE: loop exit
PB: predicated region body
PF: predicated region fallthrough
CT: control target
= control target key end

     0   :  { %10 = vsyncpa [#allocation3], 0  ;;  %s405_s0 = inlined_call_operand.hbm [shape: f32[3,3], index: 0, kind: input, shape index: {}]   ;;  %s406_s1 = inlined_call_operand.hbm [shape: f32[3,3], index: 1, kind: input, shape index: {}]   ;;  %s407_s2 = inlined_call_operand.vmem [shape: f32[3,3], index: 2, kind: input, shape index: {}]   ;;  %s408_s3 = inlined_call_operand.vmem [shape: f32[3,3], index: 3, kind: input, shape index: {}]   ;;  %s409_s4 = inlined_call_operand.vmem [shape: f32[1,3], index: 4, kind: input, shape index: {}]   ;;  %s410_s5 = inlined_call_operand.hbm [shape: f32[3,3], index: 5, kind: output, shape index: {}]  }
   0x1   :  { %11 = vsyncpa [#allocation6], 0 }
   0x2   :  { %12 = vsyncpa [#allocation4], 0  ;;  %s325_s18 = smov [#allocation2]   ;;  %s326_s20 = smov [#allocation5]  }
   0x3   :  { %s19_s19 = sshll.u32 %s325_s18, 4  ;;  %s29_s21 = sshll.u32 %s326_s20, 4  ;;  %s20_s19 = int_to_ptr.vmem [resolvable:$true] %s19_s19  ;;  %s30_s21 = int_to_ptr.vmem [resolvable:$true] %s29_s21 }
   0x4   :  { %s253_s24 = scalar_lea.hbm %s405_s0, 64 }
   0x5   :  { %p254_p0 = scmp.ne.s32.totalorder %s405_s0, %s253_s24  ;;  %p257_p1 = scmp.lt.u32.totalorder %s253_s24, %s405_s0 }
   0x7   :  { %p259_p2 = pnand %p257_p1, %p254_p0 }
   0x9   :  { %262 = shalt.err (!%p259_p2)
}
   0xa   :  { %s263_s29 = scalar_lea.vmem %s20_s19, 64  ;;  %p268_p4 = scmp.lt.s32.totalorder %s20_s19, %s20_s19 }
   0xb   :  { %p264_p3 = scmp.ne.s32.totalorder %s20_s19, %s263_s29  ;;  %p269_p5 = scmp.lt.s32.totalorder %s263_s29, %s263_s29 }
   0xd   :  { %p270_p6 = por %p269_p5, %p268_p4 }
   0xf   :  { %p271_p7 = pnand %p270_p6, %p264_p3 }
  0x11   :  { %274 = shalt.err (!%p271_p7)
}
  0x12   :  { %22 = dma.hbm_to_vmem [thread:$0]  %s405_s0, 64, %s20_s19, [#allocation3]  }
  0x13   :  { %s275_s9 = scalar_lea.hbm %s406_s1, 64 }
  0x14   :  { %p276_p8 = scmp.ne.s32.totalorder %s406_s1, %s275_s9  ;;  %p279_p9 = scmp.lt.u32.totalorder %s275_s9, %s406_s1 }
  0x16   :  { %p281_p10 = pnand %p279_p9, %p276_p8 }
  0x18   :  { %284 = shalt.err (!%p281_p10)
}
  0x19   :  { %s285_s14 = scalar_lea.vmem %s30_s21, 64  ;;  %p290_p12 = scmp.lt.s32.totalorder %s30_s21, %s30_s21 }
  0x1a   :  { %p286_p11 = scmp.ne.s32.totalorder %s30_s21, %s285_s14  ;;  %p291_p13 = scmp.lt.s32.totalorder %s285_s14, %s285_s14 }
  0x1c   :  { %p292_p0 = por %p291_p13, %p290_p12 }
  0x1e   :  { %p293_p1 = pnand %p292_p0, %p286_p11 }
  0x20   :  { %296 = shalt.err (!%p293_p1)
}
  0x21   :  { %32 = dma.hbm_to_vmem [thread:$0]  %s406_s1, 64, %s30_s21, [#allocation6]  }
  0x22   :  { %319 = dma.done.wait [#allocation3], 64  }
  0x23   :  { %320 = vsyncadd [#allocation3], 4294967232 }
  0x24   :  { %321 = dma.done.wait [#allocation6], 64  }
  0x25   :  { %322 = vsyncadd [#allocation6], 4294967232  ;;  %v327_v0 = vmov 0.0   ;;  %vm328_vm0 = vmmov 0   ;;  %vm53_vm1 = vcmask 1042432   ;;  %vm49_vm2 = vcmask 23552  }
  0x26   :  { %238 = vmatprep.subr.mxu0 %v327_v0  ;;  %243 = vmatprep.subr.mxu1 %v327_v0  ;;  %v48_v1 = vld [vmem:[%s408_s3] sm:$0x7]  ;;  %v46_v2 = vld [vmem:[#allocation5] sm:$0x7]  ;;  %s329_s21 = smov [#allocation7]   ;;  %vm211_vm3 = vcmask 18432  }
  0x27   :  { %240 = vmatprep.mubr.msk.f32.mxu0 %vm328_vm0, %v327_v0  ;;  %245 = vmatprep.mubr.msk.f32.mxu1 %vm328_vm0, %v327_v0  ;;  %v47_v3 = vld [vmem:[%s407_s2] sm:$0x7]  ;;  %s219_s22 = sshll.u32 %s329_s21, 4  ;;  %s220_s22 = int_to_ptr.vmem [resolvable:$true] %s219_s22 }
  0x28   :  { %239 = vmatpush3.msk.msra.mxu0 %vm53_vm1, %v48_v1  ;;  %244 = vmatpush3.msk.msra.mxu1 %vm53_vm1, %v46_v2  ;;  %v45_v4 = vld [vmem:[#allocation2] sm:$0x7]  ;;  %s297_s2 = scalar_lea.vmem %s220_s22, 64  ;;  %p302_p3 = scmp.lt.s32.totalorder %s220_s22, %s220_s22 }
  0x29   :  { %241 = vmatmul.mubr.msk.f32.vlgmr.msra.gmra.mrb[0].mxu0 %vm49_vm2, %v47_v3  ;;  %246 = vmatmul.mubr.msk.f32.vlgmr.msra.gmra.mrb[0].mxu1 %vm49_vm2, %v45_v4  ;;  %v233_v7 = vld [vmem:[%s409_s4] ss:$0 sm:$0xff]  ;;  %p298_p2 = scmp.ne.s32.totalorder %s220_s22, %s297_s2  ;;  %p303_p4 = scmp.lt.s32.totalorder %s297_s2, %s297_s2 }
  0x2b   :  { %p304_p5 = por %p303_p4, %p302_p3 }
  0x2d   :  { %p305_p6 = pnand %p304_p5, %p298_p2 }
  0xfc   :  { %v123_v5 = vpop.f32.mrb[0].mxu0  ;;  %v199_v6 = vpop.f32.mrb[0].mxu1 }
  0xfd   :  { %v200_v8 = vadd.f32 %v199_v6, %v123_v5  ;;  %v242_v9 = vpop.f32.mrb[1].mxu0  ;;  %v247_v10 = vpop.f32.mrb[1].mxu1 }
  0xff   :  { %v210_v11 = vadd.f32 %v233_v7, %v200_v8 }
 0x101   :  { %212 = vst.msk [vmem:[#allocation7] sm:$0x7] %vm211_vm3, %v210_v11 }
 0x102   :  { %308 = shalt.err (!%p305_p6)
}
 0x103   :  { %s309_s4 = scalar_lea.hbm %s410_s5, 64 }
 0x104   :  { %p310_p7 = scmp.ne.s32.totalorder %s410_s5, %s309_s4  ;;  %p313_p8 = scmp.lt.u32.totalorder %s309_s4, %s410_s5 }
 0x106   :  { %p315_p9 = pnand %p313_p8, %p310_p7 }
 0x108   :  { %318 = shalt.err (!%p315_p9)
}
 0x109   :  { %222 = dma.vmem_to_hbm [thread:$0]  %s220_s22, 64, %s410_s5, [#allocation4]  }
 0x10a   :  { %323 = dma.done.wait [#allocation4], 64  }
 0x10b   :  { %324 = vsyncadd [#allocation4], 4294967232 }
 0x10c   :  { %226 = vsyncpa [#allocation3], 1 }
 0x10d   :  { %227 = vsyncpa [#allocation6], 1 }
 0x10e   :  { %228 = vsyncpa [#allocation4], 1 }

</bundles_post_ra>
